<compile_context>
chip_gen: v5e
topology: v5e:2x2
jax: 0.10.0
libtpu: 0.0.40
codegen_flags: <defaults>
</compile_context>

<pallas_src>
import functools

import jax
import jax.numpy as jnp
from jax.experimental import pallas as pl
from jax.experimental.pallas import tpu as pltpu

_LANE = 128
_SUBLANE = 8


def _ceil_to(x, m):
    return ((x + m - 1) // m) * m


def _pad2(x, rows, cols):
    return jnp.pad(x, ((0, rows - x.shape[0]), (0, cols - x.shape[1])))


def _pick_batch_tile(batch, kp, dp, tile_budget_bytes):
    """Largest multiple-of-8 batch tile whose double-buffered traffic fits the budget."""
    per_row = 4 * (kp * dp        # components block (dominant writeback)
                   + 2 * dp       # pattern in + synthesized out
                   + 2 * kp)      # packed concentration/effective out
    resident = 2 * 4 * (kp * dp + dp * 2 * kp + 2 * kp)   # base, fused W, fused b (x2 bufs)
    avail = max(tile_budget_bytes - resident, 2 * per_row * _SUBLANE)
    tb = avail // (2 * per_row)                            # 2x: double buffering
    tb = max(_SUBLANE, (tb // _SUBLANE) * _SUBLANE)
    tb = min(tb, 512)                                      # ~512-row tiles ~= HBM roofline
    tb = min(tb, _ceil_to(max(batch, 1), _SUBLANE))
    return int(tb)


def _mcr_kernel(pattern_ref, base_ref, w_cat_ref, b_cat_ref,
                synth_ref, conc_eff_ref, comp_out_ref,
                *, inv_tau, training, thresh, kp):
    """One batch tile of EBSelectiveMCR.forward.

    pattern_ref  : (TB, Dp)     input pattern tile
    base_ref     : (Kp, Dp)     |components| * sigmoid(sparsity_logits / tau)  (resident)
    w_cat_ref    : (Dp, 2*Kp)   [w_select | w_concentration]                    (resident)
    b_cat_ref    : (1, 2*Kp)    [b_select | b_concentration]                    (resident)
    synth_ref    : (TB, Dp)     synthesized pattern
    conc_eff_ref : (TB, 2*Kp)   [concentration*eff | eff]  packed lane slab
    comp_out_ref : (TB, Kp, Dp) gated components (dominant HBM writeback)
    """
    pattern = pattern_ref[...]                                    # (TB, Dp)
    base = base_ref[...]                                          # (Kp, Dp)

    # Fused selector head + concentration regressor: one MXU matmul instead of two.
    logits = jnp.dot(pattern, w_cat_ref[...],
                     preferred_element_type=jnp.float32) + b_cat_ref[...]   # (TB, 2Kp)
    sel_logits = logits[:, :kp]                                   # (TB, Kp)
    conc_raw = logits[:, kp:]                                     # (TB, Kp)

    # DynamicEBSelectiveModule gate (sigmoid energy gate); 1/tau folded to a constant.
    sel_prob = jax.nn.sigmoid(sel_logits * inv_tau)
    if training:
        eff = sel_prob
    else:
        eff = (sel_prob > thresh).astype(jnp.float32)

    conc = jnp.abs(conc_raw)                                      # abs(Linear(pattern))
    conc_out = conc * eff                                         # concentration * eff

    # components * sparsity * effective_indices
    comp_out_ref[...] = (base[None, :, :] * eff[:, :, None]).astype(comp_out_ref.dtype)

    # default_aggreate_function: sum_k conc_out[b,k] * comp_out[b,k,d]
    #                          = (conc * eff^2) @ base  -> MXU matmul
    synth_ref[...] = jnp.dot(conc_out * eff, base,
                             preferred_element_type=jnp.float32)

    # Pack the two (TB, Kp) outputs into one lane slab (fewer narrow stores).
    conc_eff_ref[...] = jnp.concatenate([conc_out, eff], axis=1)


def eb_selective_mcr_forward(pattern, params, *, training=True,
                             temperature_train=1.0, temperature_eval=0.001,
                             select_prob_threshold=0.99994,
                             batch_tile=None,
                             components_dtype=jnp.float32,
                             vmem_limit_bytes=40 * 1024 * 1024):
    """Pallas implementation of EBSelectiveMCR.forward (default config:
    sparse_component=True, non_negative_component=True, component_norm=None,
    hidden_size_extension=None, identity post-processing, default aggregate)."""
    tau = float(temperature_train if training else temperature_eval)
    inv_tau = 1.0 / tau

    pattern = jnp.asarray(pattern, jnp.float32)
    B, D = pattern.shape
    K = params["comp_abs"].shape[0]

    kp = _ceil_to(K, _SUBLANE)   # sublane-align K (second-to-last dim of components block)
    dp = _ceil_to(D, _LANE)      # lane-dense last dim -> unmasked vst on every store

    if batch_tile is None:
        tb = _pick_batch_tile(B, kp, dp, tile_budget_bytes=24 * 1024 * 1024)
    else:
        tb = max(_SUBLANE, _ceil_to(int(batch_tile), _SUBLANE))
    bp = _ceil_to(B, tb)
    num_tiles = bp // tb

    # ---- batch-independent preprocessing hoisted out of the per-tile grid body ----
    # FixedEBSelectiveModule gate * |components|, padded to (kp, dp). (Zero padding is
    # inert: padded component rows/cols are exactly zero downstream.)
    sparsity = jax.nn.sigmoid(params["sparsity_logits"] * inv_tau)
    base = _pad2(params["comp_abs"] * sparsity, kp, dp)

    # Fuse the selector head and the concentration regressor into one (dp, 2*kp) weight.
    w_cat = jnp.concatenate([_pad2(params["w_sel"], dp, kp),
                             _pad2(params["w_conc"], dp, kp)], axis=1)
    b_cat = jnp.concatenate([_pad2(params["b_sel"], 1, kp),
                             _pad2(params["b_conc"], 1, kp)], axis=1)

    pattern_p = _pad2(pattern, bp, dp)

    kernel = functools.partial(_mcr_kernel, inv_tau=inv_tau, training=bool(training),
                               thresh=float(select_prob_threshold), kp=kp)

    out_shapes = (
        jax.ShapeDtypeStruct((bp, dp), jnp.float32),            # synthesized_pattern
        jax.ShapeDtypeStruct((bp, 2 * kp), jnp.float32),        # [conc*eff | eff]
        jax.ShapeDtypeStruct((bp, kp, dp), components_dtype),   # gated components
    )

    synth_p, conc_eff_p, comp_p = pl.pallas_call(
        kernel,
        out_shape=out_shapes,
        grid=(num_tiles,),
        in_specs=[
            pl.BlockSpec((tb, dp), lambda i: (i, 0)),           # pattern tile
            pl.BlockSpec((kp, dp), lambda i: (0, 0)),           # base          (resident)
            pl.BlockSpec((dp, 2 * kp), lambda i: (0, 0)),       # fused weights (resident)
            pl.BlockSpec((1, 2 * kp), lambda i: (0, 0)),        # fused bias    (resident)
        ],
        out_specs=(
            pl.BlockSpec((tb, dp), lambda i: (i, 0)),
            pl.BlockSpec((tb, 2 * kp), lambda i: (i, 0)),
            pl.BlockSpec((tb, kp, dp), lambda i: (i, 0, 0)),
        ),
        compiler_params=pltpu.CompilerParams(
            dimension_semantics=("parallel",),
            vmem_limit_bytes=int(vmem_limit_bytes)),
    )(pattern_p, base, w_cat, b_cat)

    # TODO(synk): exact energy formulas of FixedEBSelectiveModule / DynamicEBSelectiveModule
    # are not available; reconstructed as the mean of the corresponding gate logits.
    # Both are batch-independent / linear reductions, so they are evaluated here as tiny
    # XLA ops rather than accumulated across the "parallel" batch grid axis (per-core
    # accumulation would be racy / wrong under v7x megacore partitioning).
    sparsity_energy = jnp.mean(params["sparsity_logits"])
    select_energy = jnp.mean(pattern @ params["w_sel"] + params["b_sel"])

    conc_out = conc_eff_p[:B, :K]
    eff = conc_eff_p[:B, kp:kp + K]
    return {
        "synthesized_pattern": synth_p[:B, :D],
        "concentration": conc_out[:, :, None],
        "components": comp_p[:B, :K, :D],
        "effective_indices": eff,
        "sparsity_energy": sparsity_energy,
        "select_energy": select_energy,
    }


def _reference_forward(pattern, params, *, training, tau, thresh):
    """Pure-JAX reference mirroring the PyTorch forward semantics."""
    sel_logits = pattern @ params["w_sel"] + params["b_sel"]
    eff = jax.nn.sigmoid(sel_logits / tau)
    if not training:
        eff = (eff > thresh).astype(jnp.float32)
    sparsity = jax.nn.sigmoid(params["sparsity_logits"] / tau)
    conc = jnp.abs(pattern @ params["w_conc"] + params["b_conc"])
    base = params["comp_abs"] * sparsity
    comp_out = base[None] * eff[:, :, None]
    conc_out = (conc * eff)[:, :, None]
    synth = (conc_out * comp_out).sum(1)          # default_aggreate_function
    return synth, conc_out, comp_out, eff


def make_params(key, num_components, dim_components):
    """Deterministic synthetic parameters (shapes from EBSelectiveMCR.__init__)."""
    k1, k2, k3, k4, k5, k6 = jax.random.split(key, 6)
    K, D = num_components, dim_components
    comp_abs = jnp.abs(0.1 * jax.random.normal(k1, (K, D), jnp.float32))
    sparsity_logits = 0.5 * jax.random.normal(k2, (K, D), jnp.float32)
    w_sel = jax.random.normal(k3, (D, K), jnp.float32) / jnp.sqrt(D)
    b_sel = 0.1 * jax.random.normal(k4, (1, K), jnp.float32)
    w_conc = jax.random.normal(k5, (D, K), jnp.float32) / jnp.sqrt(D)
    b_conc = 0.1 * jax.random.normal(k6, (1, K), jnp.float32)
    return {"comp_abs": comp_abs, "sparsity_logits": sparsity_logits,
            "w_sel": w_sel, "b_sel": b_sel, "w_conc": w_conc, "b_conc": b_conc}


if __name__ == "__main__":
    B = 2      # batch
    K = 8      # num_components
    D = 32     # dim_components

    key = jax.random.PRNGKey(0)
    pkey, xkey, x2key = jax.random.split(key, 3)
    params = make_params(pkey, K, D)
    pattern = jax.random.normal(xkey, (B, D), jnp.float32)

    # Training mode (module default; tau = temperature_train = 1.0).
    out = eb_selective_mcr_forward(pattern, params, training=True)
    jax.block_until_ready(out["synthesized_pattern"])

    ref_synth, ref_conc, ref_comp, ref_eff = _reference_forward(
        pattern, params, training=True, tau=1.0, thresh=0.99994)
    assert jnp.allclose(out["synthesized_pattern"], ref_synth, atol=1e-5, rtol=1e-5)
    assert jnp.allclose(out["concentration"], ref_conc, atol=1e-5, rtol=1e-5)
    assert jnp.allclose(out["components"], ref_comp, atol=1e-5, rtol=1e-5)
    assert jnp.allclose(out["effective_indices"], ref_eff, atol=1e-5, rtol=1e-5)

    # Eval mode (hard thresholding of effective_indices, tau = temperature_eval).
    out_eval = eb_selective_mcr_forward(pattern, params, training=False)
    jax.block_until_ready(out_eval["synthesized_pattern"])
    ref_synth_e, _, _, ref_eff_e = _reference_forward(
        pattern, params, training=False, tau=0.001, thresh=0.99994)
    assert jnp.allclose(out_eval["synthesized_pattern"], ref_synth_e, atol=1e-5, rtol=1e-5)
    assert jnp.allclose(out_eval["effective_indices"], ref_eff_e)

    # Multi-tile grid + batch padding path (batch not a multiple of the tile).
    B2 = 20
    pattern2 = jax.random.normal(x2key, (B2, D), jnp.float32)
    out2 = eb_selective_mcr_forward(pattern2, params, training=True, batch_tile=8)
    jax.block_until_ready(out2["synthesized_pattern"])
    r_synth, r_conc, r_comp, r_eff = _reference_forward(
        pattern2, params, training=True, tau=1.0, thresh=0.99994)
    assert jnp.allclose(out2["synthesized_pattern"], r_synth, atol=1e-5, rtol=1e-5)
    assert jnp.allclose(out2["concentration"], r_conc, atol=1e-5, rtol=1e-5)
    assert jnp.allclose(out2["components"], r_comp, atol=1e-5, rtol=1e-5)
    assert jnp.allclose(out2["effective_indices"], r_eff, atol=1e-5, rtol=1e-5)

    print("KERNEL_OK")
</pallas_src>

<mosaic_0001>
module attributes {stable_mosaic.version = 11 : i64} {
  func.func @_mcr_kernel(%arg0: i32, %arg1: memref<8x128xf32, #tpu.memory_space<vmem>>, %arg2: memref<8x128xf32, #tpu.memory_space<vmem>>, %arg3: memref<128x16xf32, #tpu.memory_space<vmem>>, %arg4: memref<1x16xf32, #tpu.memory_space<vmem>>, %arg5: memref<8x128xf32, #tpu.memory_space<vmem>>, %arg6: memref<8x16xf32, #tpu.memory_space<vmem>>, %arg7: memref<8x8x128xf32, #tpu.memory_space<vmem>>) attributes {dimension_semantics = [#tpu.dimension_semantics<parallel>], iteration_bounds = array<i64: 1>, scalar_prefetch = 0 : i64, scratch_operands = 0 : i64, tpu.core_type = #tpu.core_type<tc>, window_params = [{transform_indices = @transform_0, window_bounds = array<i64: 8, 128>}, {pipeline_mode = #tpu.pipeline_mode<synchronous>, transform_indices = @transform_1, window_bounds = array<i64: 8, 128>}, {pipeline_mode = #tpu.pipeline_mode<synchronous>, transform_indices = @transform_2, window_bounds = array<i64: 128, 16>}, {pipeline_mode = #tpu.pipeline_mode<synchronous>, transform_indices = @transform_3, window_bounds = array<i64: 1, 16>}, {transform_indices = @transform_4, window_bounds = array<i64: 8, 128>}, {transform_indices = @transform_5, window_bounds = array<i64: 8, 16>}, {transform_indices = @transform_6, window_bounds = array<i64: 8, 8, 128>}]} {
    %c0 = arith.constant 0 : index
    %c0_0 = arith.constant 0 : index
    %0 = vector.load %arg1[%c0, %c0_0] : memref<8x128xf32, #tpu.memory_space<vmem>>, vector<8x128xf32>
    %c0_1 = arith.constant 0 : index
    %c0_2 = arith.constant 0 : index
    %1 = vector.load %arg2[%c0_1, %c0_2] : memref<8x128xf32, #tpu.memory_space<vmem>>, vector<8x128xf32>
    %c0_3 = arith.constant 0 : index
    %c0_4 = arith.constant 0 : index
    %2 = vector.load %arg3[%c0_3, %c0_4] : memref<128x16xf32, #tpu.memory_space<vmem>>, vector<128x16xf32>
    %cst = arith.constant dense<0.000000e+00> : vector<8x16xf32>
    %3 = tpu.matmul %0, %2, %cst {dimension_numbers = #tpu.dot_dimension_numbers<[1], [0], [0], [1], [0, 0, 1, 1], [], []>} : vector<8x128xf32>, vector<128x16xf32>, vector<8x16xf32> -> vector<8x16xf32>
    %c0_5 = arith.constant 0 : index
    %c0_6 = arith.constant 0 : index
    %4 = vector.load %arg4[%c0_5, %c0_6] : memref<1x16xf32, #tpu.memory_space<vmem>>, vector<1x16xf32>
    %5 = vector.broadcast %4 : vector<1x16xf32> to vector<8x16xf32>
    %6 = arith.addf %3, %5 : vector<8x16xf32>
    %7 = vector.extract_strided_slice %6 {offsets = [0, 0], sizes = [8, 8], strides = [1, 1]} : vector<8x16xf32> to vector<8x8xf32>
    %8 = vector.extract_strided_slice %6 {offsets = [0, 8], sizes = [8, 8], strides = [1, 1]} : vector<8x16xf32> to vector<8x8xf32>
    %cst_7 = arith.constant 1.000000e+00 : f32
    %9 = vector.broadcast %cst_7 : f32 to vector<8x8xf32>
    %10 = arith.mulf %7, %9 : vector<8x8xf32>
    %11 = arith.negf %10 : vector<8x8xf32>
    %12 = math.exp %11 : vector<8x8xf32>
    %cst_8 = arith.constant 1.000000e+00 : f32
    %13 = vector.broadcast %cst_8 : f32 to vector<8x8xf32>
    %14 = arith.addf %13, %12 : vector<8x8xf32>
    %15 = arith.divf %13, %14 : vector<8x8xf32>
    %16 = math.absf %8 : vector<8x8xf32>
    %17 = arith.mulf %16, %15 : vector<8x8xf32>
    %18 = vector.shape_cast %1 : vector<8x128xf32> to vector<1x8x128xf32>
    %19 = vector.shape_cast %15 : vector<8x8xf32> to vector<8x8x1xf32>
    %20 = vector.broadcast %18 : vector<1x8x128xf32> to vector<8x8x128xf32>
    %21 = vector.broadcast %19 : vector<8x8x1xf32> to vector<8x8x128xf32>
    %22 = arith.mulf %20, %21 : vector<8x8x128xf32>
    %c0_9 = arith.constant 0 : index
    %c0_10 = arith.constant 0 : index
    %c0_11 = arith.constant 0 : index
    %23 = vector.load %arg7[%c0_9, %c0_10, %c0_11] : memref<8x8x128xf32, #tpu.memory_space<vmem>>, vector<8x8x128xf32>
    tpu.vector_store %arg7[%c0_9, %c0_10, %c0_11], %22 {strides = array<i32>} : memref<8x8x128xf32, #tpu.memory_space<vmem>>, vector<8x8x128xf32>,
    %24 = arith.mulf %17, %15 : vector<8x8xf32>
    %cst_12 = arith.constant dense<0.000000e+00> : vector<8x128xf32>
    %25 = tpu.matmul %24, %1, %cst_12 {dimension_numbers = #tpu.dot_dimension_numbers<[1], [0], [0], [1], [0, 0, 1, 1], [], []>} : vector<8x8xf32>, vector<8x128xf32>, vector<8x128xf32> -> vector<8x128xf32>
    %c0_13 = arith.constant 0 : index
    %c0_14 = arith.constant 0 : index
    %26 = vector.load %arg5[%c0_13, %c0_14] : memref<8x128xf32, #tpu.memory_space<vmem>>, vector<8x128xf32>
    tpu.vector_store %arg5[%c0_13, %c0_14], %25 {strides = array<i32>} : memref<8x128xf32, #tpu.memory_space<vmem>>, vector<8x128xf32>,
    %27 = tpu.concatenate %17, %15 in 1 : vector<8x8xf32>, vector<8x8xf32> -> vector<8x16xf32>
    %c0_15 = arith.constant 0 : index
    %c0_16 = arith.constant 0 : index
    %28 = vector.load %arg6[%c0_15, %c0_16] : memref<8x16xf32, #tpu.memory_space<vmem>>, vector<8x16xf32>
    tpu.vector_store %arg6[%c0_15, %c0_16], %27 {strides = array<i32>} : memref<8x16xf32, #tpu.memory_space<vmem>>, vector<8x16xf32>,
    return
  }
  func.func @transform_0(%arg0: i32) -> (i32, i32) {
    %c0_i32 = arith.constant 0 : i32
    %c0_i32_0 = arith.constant 0 : i32
    return %arg0, %c0_i32 : i32, i32
  }
  func.func @transform_1(%arg0: i32) -> (i32, i32) {
    %c0_i32 = arith.constant 0 : i32
    %c0_i32_0 = arith.constant 0 : i32
    %c0_i32_1 = arith.constant 0 : i32
    return %c0_i32, %c0_i32_0 : i32, i32
  }
  func.func @transform_2(%arg0: i32) -> (i32, i32) {
    %c0_i32 = arith.constant 0 : i32
    %c0_i32_0 = arith.constant 0 : i32
    %c0_i32_1 = arith.constant 0 : i32
    return %c0_i32, %c0_i32_0 : i32, i32
  }
  func.func @transform_3(%arg0: i32) -> (i32, i32) {
    %c0_i32 = arith.constant 0 : i32
    %c0_i32_0 = arith.constant 0 : i32
    %c0_i32_1 = arith.constant 0 : i32
    return %c0_i32, %c0_i32_0 : i32, i32
  }
  func.func @transform_4(%arg0: i32) -> (i32, i32) {
    %c0_i32 = arith.constant 0 : i32
    %c0_i32_0 = arith.constant 0 : i32
    return %arg0, %c0_i32 : i32, i32
  }
  func.func @transform_5(%arg0: i32) -> (i32, i32) {
    %c0_i32 = arith.constant 0 : i32
    %c0_i32_0 = arith.constant 0 : i32
    return %arg0, %c0_i32 : i32, i32
  }
  func.func @transform_6(%arg0: i32) -> (i32, i32, i32) {
    %c0_i32 = arith.constant 0 : i32
    %c0_i32_0 = arith.constant 0 : i32
    %c0_i32_1 = arith.constant 0 : i32
    return %arg0, %c0_i32, %c0_i32_0 : i32, i32, i32
  }
}

</mosaic_0001>

<bundles_post_ra>
// kernel: tpu_custom_call.1
= control target key start
LH: loop header
LB: loop body
LE: loop exit
PB: predicated region body
PF: predicated region fallthrough
CT: control target
= control target key end

     0   :  { %12 = vsyncpa [#allocation3], 0  ;;  %s457_s0 = inlined_call_operand.vmem [shape: f32[8,128], index: 0, kind: input, shape index: {}]   ;;  %s458_s1 = inlined_call_operand.vmem [shape: f32[8,128], index: 1, kind: input, shape index: {}]   ;;  %s459_s2 = inlined_call_operand.vmem [shape: f32[128,16], index: 2, kind: input, shape index: {}]   ;;  %s460_s3 = inlined_call_operand.vmem [shape: f32[1,16], index: 3, kind: input, shape index: {}]   ;;  %s461_s4 = inlined_call_operand.hbm [shape: f32[8,128], index: 4, kind: output, shape index: {0}]   ;;  %s462_s5 = inlined_call_operand.hbm [shape: f32[8,16], index: 5, kind: output, shape index: {1}]   ;;  %s463_s6 = inlined_call_operand.hbm [shape: f32[8,8,128], index: 6, kind: output, shape index: {2}]  }
   0x1   :  { %v39_v0 = vld [vmem:[%s459_s2 + $0x78] sm:$0xff]  ;;  %v38_v1 = vld [vmem:[%s459_s2 + $0x70] sm:$0xff]  ;;  %v37_v2 = vld [vmem:[%s459_s2 + $0x68] sm:$0xff] }
   0x2   :  { %44 = vmatpush.msra.mxu0 %v39_v0  ;;  %v36_v3 = vld [vmem:[%s459_s2 + $0x60] sm:$0xff]  ;;  %v35_v4 = vld [vmem:[%s459_s2 + $0x58] sm:$0xff] }
   0x4   :  { %45 = vmatpush.msra.mxu0 %v38_v1 }
   0x6   :  { %46 = vmatpush.msra.mxu0 %v37_v2 }
   0x7   :  { %13 = vsyncpa [#allocation5], 0  ;;  %v34_v5 = vld [vmem:[%s459_s2 + $0x50] sm:$0xff]  ;;  %v33_v6 = vld [vmem:[%s459_s2 + $0x48] sm:$0xff]  ;;  %v90_v17 = vlaneseq  ;;  %vm165_vm4 = vcmask 64512   ;;  %vm194_vm5 = vcmask 130048  }
   0x8   :  { %47 = vmatpush.msra.mxu0 %v36_v3  ;;  %v32_v7 = vld [vmem:[%s459_s2 + $0x40] sm:$0xff]  ;;  %v31_v8 = vld [vmem:[%s459_s2 + $0x38] sm:$0xff]  ;;  %v30_v9 = vld [vmem:[%s459_s2 + $0x30] sm:$0xff]  ;;  %s339_s9 = smov [#allocation4]   ;;  %s214_s13 = sshll.u32 %s462_s5, 4  ;;  %s215_s13 = int_to_ptr.hbm [resolvable:$true] %s214_s13 }
   0x9   :  { %v29_v10 = vld [vmem:[%s459_s2 + $0x28] sm:$0xff]  ;;  %v28_v11 = vld [vmem:[%s459_s2 + $0x20] sm:$0xff]  ;;  %v27_v12 = vld [vmem:[%s459_s2 + $0x18] sm:$0xff]  ;;  %v91_v18 = vshrl.u32 %v90_v17, 7  ;;  %s212_s10 = sshll.u32 %s339_s9, 4  ;;  %s340_s14 = smov [#allocation6]   ;;  %s213_s10 = int_to_ptr.vmem [resolvable:$true] %s212_s10 }
   0xa   :  { %48 = vmatpush.msra.mxu0 %v35_v4  ;;  %v26_v13 = vld [vmem:[%s459_s2 + $0x10] sm:$0xff]  ;;  %v25_v14 = vld [vmem:[%s459_s2 + $0x8] sm:$0xff]  ;;  %v24_v15 = vld [vmem:[%s459_s2] sm:$0xff]  ;;  %s222_s15 = sshll.u32 %s340_s14, 4  ;;  %s224_s18 = sshll.u32 %s463_s6, 4  ;;  %s223_s15 = int_to_ptr.vmem [resolvable:$true] %s222_s15  ;;  %s225_s18 = int_to_ptr.hbm [resolvable:$true] %s224_s18 }
   0xb   :  { %v22_v16 = vld [vmem:[%s457_s0] sm:$0xff]  ;;  %254 = vset.pattern.permute.xlu2 %v91_v18  ;;  %253 = vset.pattern.permute.xlu1 %v91_v18  ;;  %s341_s19 = smov 128   ;;  %s342_s5 = smov [#allocation2]  }
   0xc   :  { %49 = vmatpush.msra.mxu0 %v34_v5  ;;  %255 = vset.pattern.permute.xlu0 %v91_v18  ;;  %v256_v19 = vld [vmem:[%s460_s3] ss:$0 sm:$0xff]  ;;  %s337_s3 = smov 8   ;;  %s201_s20 = sshll.u32 %s342_s5, 4  ;;  %s202_s20 = int_to_ptr.vmem [resolvable:$true] %s201_s20 }
   0xd   :  { %v435_v31 = vld [vmem:[%s458_s1] sm:$0xff]  ;;  %s338_s1 = smov 120   ;;  %s203_s23 = sshll.u32 %s461_s4, 4  ;;  %s204_s23 = int_to_ptr.hbm [resolvable:$true] %s203_s23 }
   0xe   :  { %50 = vmatpush.msra.mxu0 %v33_v6  ;;  %183 = vmatpush.msra.mxu1 %v435_v31 }
  0x10   :  { %51 = vmatpush.msra.mxu0 %v32_v7 }
  0x12   :  { %52 = vmatpush.msra.mxu0 %v31_v8 }
  0x14   :  { %53 = vmatpush.msra.mxu0 %v30_v9 }
  0x16   :  { %54 = vmatpush.msra.mxu0 %v29_v10 }
  0x18   :  { %55 = vmatpush.msra.mxu0 %v28_v11 }
  0x1a   :  { %56 = vmatpush.msra.mxu0 %v27_v12 }
  0x1c   :  { %57 = vmatpush.msra.mxu0 %v26_v13 }
  0x1e   :  { %58 = vmatpush.msra.mxu0 %v25_v14 }
  0x20   :  { %59 = vmatpush.msra.mxu0 %v24_v15 }
  0x21   :  { %60 = vmatmul.f32.vlgmr.msra.gmra.mxu0 %v22_v16 }
  0x9e   :  { %v61_v20 = vpop.f32.mrf.mxu0 }
  0x9f   :  { %v62_v21 = vadd.f32 %v256_v19, %v61_v20 }
  0xa1   :  { %v245_v22 = vmul.f32 -1.442695, %v62_v21  ;;  %v83_v49 = vand.u32 2147483647, %v62_v21 }
  0xa3   :  { %257 = vpow2.f32 %v245_v22 }
  0xa9   :  { %v258_v23 = vpop.eup %257 }
  0xaa   :  { %v67_v24 = vadd.f32 1.0, %v258_v23 }
  0xac   :  { %259 = vrcp.f32 %v67_v24  ;;  %v79_v28 = vand.u32 2147483648, %v67_v24  ;;  %v77_v30 = vand.u32 2147483647, %v67_v24  ;;  %vm73_vm1 = vweird.f32 %v67_v24 }
  0xae   :  { %v80_v33 = vor.u32 1.1754944e-38, %v79_v28  ;;  %vm78_vm3 = vcmp.eq.f32.partialorder %v77_v30, 8.507059e+37 }
  0xb2   :  { %v260_v25 = vpop.eup %259 }
  0xb3   :  { %v69_v26 = vmul.f32 %v260_v25, %v67_v24  ;;  %vm74_vm0 = vweird.f32 %v260_v25 }
  0xb4   :  { %vm75_vm2 = vmor %vm73_vm1, %vm74_vm0 }
  0xb5   :  { %v70_v27 = vsub.f32 1.0, %v69_v26 }
  0xb7   :  { %v71_v29 = vmul.f32 %v260_v25, %v70_v27 }
  0xb9   :  { %v72_v32 = vadd.f32 %v260_v25, %v71_v29 }
  0xbb   :  { %v76_v34 = vsel %vm75_vm2, %v260_v25, %v72_v32 }
  0xbc   :  { %v81_v35 = vsel %vm78_vm3, %v80_v33, %v76_v34 }
  0xbd   :  { %85 = vrot.lane.b32.xlu0 %v81_v35, %s337_s3  ;;  %v103_v36 = vperm.slane %v81_v35, 2  ;;  %v89_v37 = vperm.slane %v81_v35, 0  ;;  %v110_v38 = vperm.slane %v81_v35, 3  ;;  %v96_v39 = vperm.slane %v81_v35, 1 }
  0xbe   :  { %v131_v40 = vperm.slane %v81_v35, 6  ;;  %v124_v41 = vperm.slane %v81_v35, 5  ;;  %v138_v42 = vperm.slane %v81_v35, 7  ;;  %v117_v57 = vperm.slane %v81_v35, 4 }
  0xbf   :  { %108 = vperm.xlu2 %254, %v103_v36   ;;  %94 = vperm.xlu1 %253, %v89_v37  }
  0xc7   :  { %115 = vperm.xlu2 %254, %v110_v38   ;;  %101 = vperm.xlu1 %253, %v96_v39  }
  0xcf   :  { %136 = vperm.xlu2 %254, %v131_v40   ;;  %129 = vperm.xlu1 %253, %v124_v41  }
  0xd7   :  { %143 = vperm.xlu1 %253, %v138_v42  }
 0x119   :  { %v109_v43 = vpop.permute.xlu2 %108 }
 0x11a   :  { %v147_v44 = vmul.f32 %v109_v43, %v435_v31 }
 0x11c   :  { %155 = vst [vmem:[#allocation6 + $0x10] sm:$0xff] %v147_v44 }
 0x121   :  { %v116_v45 = vpop.permute.xlu2 %115 }
 0x122   :  { %v148_v46 = vmul.f32 %v116_v45, %v435_v31 }
 0x124   :  { %156 = vst [vmem:[#allocation6 + $0x18] sm:$0xff] %v148_v46 }
 0x129   :  { %v137_v47 = vpop.permute.xlu2 %136 }
 0x12a   :  { %v151_v48 = vmul.f32 %v137_v47, %v435_v31 }
 0x12c   :  { %159 = vst [vmem:[#allocation6 + $0x30] sm:$0xff] %v151_v48 }
 0x12f   :  { %v86_v50 = vpop.permute.xlu0 %85 }
 0x130   :  { %v88_v51 = vmul.f32 %v86_v50, %v83_v49 }
 0x131   :  { %v95_v52 = vpop.permute.xlu1 %94 }
 0x132   :  { %v161_v53 = vmul.f32 %v88_v51, %v86_v50  ;;  %v145_v54 = vmul.f32 %v95_v52, %v435_v31  ;;  %190 = vrot.lane.b32.xlu2 %v88_v51, %s338_s1 }
 0x134   :  { %153 = vst [vmem:[#allocation6] sm:$0xff] %v145_v54  ;;  %163 = vrot.lane.b32.xlu0 %v161_v53, %s338_s1 }
 0x139   :  { %v102_v55 = vpop.permute.xlu1 %101 }
 0x13a   :  { %v146_v56 = vmul.f32 %v102_v55, %v435_v31 }
 0x13c   :  { %154 = vst [vmem:[#allocation6 + $0x8] sm:$0xff] %v146_v56  ;;  %122 = vperm.xlu0 %255, %v117_v57  }
 0x141   :  { %v130_v58 = vpop.permute.xlu1 %129 }
 0x142   :  { %v150_v59 = vmul.f32 %v130_v58, %v435_v31 }
 0x144   :  { %158 = vst [vmem:[#allocation6 + $0x28] sm:$0xff] %v150_v59 }
 0x149   :  { %v144_v60 = vpop.permute.xlu1 %143 }
 0x14a   :  { %v152_v61 = vmul.f32 %v144_v60, %v435_v31 }
 0x14c   :  { %160 = vst [vmem:[#allocation6 + $0x38] sm:$0xff] %v152_v61 }
 0x18c   :  { %v191_v62 = vpop.permute.xlu2 %190 }
 0x18d   :  { %v193_v63 = vsel %vm165_vm4, %v191_v62, %v86_v50 }
 0x18e   :  { %195 = vst.msk [vmem:[#allocation4] sm:$0xff] %vm194_vm5, %v193_v63 }
 0x18f   :  { %217 = dma.vmem_to_hbm [thread:$0]  %s213_s10, 128, %s215_s13, [#allocation5]  }
 0x1a6   :  { %v164_v0 = vpop.permute.xlu0 %163 }
 0x1a7   :  { %246 = vmatmul.msk.f32.vlgmr.msra.gmra.mxu1 %vm165_vm4, %v164_v0 }
 0x1ae   :  { %v123_v1 = vpop.permute.xlu0 %122 }
 0x1af   :  { %v149_v2 = vmul.f32 %v123_v1, %v435_v31 }
 0x1b1   :  { %157 = vst [vmem:[#allocation6 + $0x20] sm:$0xff] %v149_v2 }
 0x1b2   :  { %230 = dma.vmem_to_hbm [thread:$0]  %s223_s15, 1024, %s225_s18, [#allocation5], %s341_s19, %s341_s19, %s337_s3  }
 0x224   :  { %v185_v3 = vpop.f32.mrf.mxu1 }
 0x225   :  { %188 = vst [vmem:[#allocation2] sm:$0xff] %v185_v3 }
 0x226   :  { %206 = dma.vmem_to_hbm [thread:$0]  %s202_s20, 128, %s204_s23, [#allocation3]  }
 0x227   :  { %333 = dma.done.wait [#allocation3], 128  }
 0x228   :  { %334 = vsyncadd [#allocation3], 4294967168 }
 0x229   :  { %335 = dma.done.wait [#allocation5], 1152  }
 0x22a   :  { %336 = vsyncadd [#allocation5], 4294966144 }
 0x22b   :  { %243 = vsyncpa [#allocation3], 1 }
 0x22c   :  { %244 = vsyncpa [#allocation5], 1 }

</bundles_post_ra>
